<compile_context>
chip_gen: v7x
topology: tpu7x:2x2x1
jax: 0.10.0
libtpu: 0.0.40
codegen_flags: <defaults>
</compile_context>

<pallas_src>
import jax
import jax.numpy as jnp
from jax.experimental import pallas as pl
from jax.experimental.pallas import tpu as pltpu


# ---------------------------------------------------------------------------
# generation-aware budgets
# ---------------------------------------------------------------------------
def _budget():
    """(target_block_bytes, vmem_limit_bytes)."""
    try:
        vmem = int(getattr(pltpu.get_tpu_info(), "vmem_capacity_bytes", 0) or 0)
    except Exception:
        vmem = 0
    if vmem >= 100 * 1024 * 1024:                 # v5e / v6e: 128 MiB physical
        return 4 * 1024 * 1024, 64 * 1024 * 1024
    return 2 * 1024 * 1024, 32 * 1024 * 1024      # v7x (64 MiB) or unknown


# ---------------------------------------------------------------------------
# block-size helpers (host side, trace time)
# ---------------------------------------------------------------------------
def _pick_gate_blocks(n, cin, s1, itemsize, target):
    """(bn, s_blk) for the pooling kernel.

    bn is a multiple of 8 or the full batch (the 2-D gate output block needs an
    8-aligned-or-full second-minor dim); s_blk is the full spatial extent or a
    multiple of 128 and is sized *given* bn, so the block stays ~target bytes.
    """
    row_bytes = cin * s1 * itemsize
    fit = int(target // max(row_bytes, 1))        # batch rows fitting the budget
    if fit >= n:
        bn = n
        if n > 8:                                 # >=2 batch blocks so both v7x
            bn = max(8, (n // 2) // 8 * 8)        # TensorCores pool x1
    elif fit >= 8:
        bn = fit // 8 * 8
    else:
        bn = min(n, 8)
    if bn * row_bytes <= target:
        s_blk = s1                                # full spatial -> no masking
    else:
        s_blk = (target // (bn * cin * itemsize)) // 128 * 128
        s_blk = int(min(s1, max(128, s_blk)))
    return int(bn), int(s_blk)


def _pick_scale_blocks(rows, cols, itemsize, target):
    """(r_blk, c_blk) for the 2-D (N*Cout, S2) streaming pass."""
    if rows * cols * itemsize <= target:
        return int(rows), int(cols)               # single full block
    min_rows = max(8, 32 // itemsize)             # dense sublane tile: f32 8, bf16 16
    if cols * itemsize * min_rows <= target:      # full (lane-dense) columns
        r = (target // (cols * itemsize)) // min_rows * min_rows
        return int(min(rows, max(min_rows, r))), int(cols)
    c = (target // (itemsize * min_rows)) // 128 * 128
    return int(min(rows, min_rows)), int(min(cols, max(128, c)))


# ---------------------------------------------------------------------------
# kernel 1: gate = sigmoid( mean_spatial(x1) @ W )        (output in x2.dtype)
# ---------------------------------------------------------------------------
def _make_gate_kernel(s1, s_blk):
    inv_s1 = 1.0 / float(s1)
    needs_mask = (s1 % s_blk) != 0                # ragged last spatial chunk?

    def kernel(x1_ref, w_ref, g_ref, acc_ref):
        # x1_ref: (bn, Cin, s_blk)   w_ref: (Cin, Cout) f32
        # g_ref : (bn, Cout)         acc_ref: (bn, Cin) f32
        k = pl.program_id(1)

        @pl.when(k == 0)
        def _init():
            acc_ref[...] = jnp.zeros_like(acc_ref)

        x = x1_ref[...].astype(jnp.float32)
        if needs_mask:
            # zero out-of-range lanes so OOB garbage never enters the sum
            col = k * s_blk + jax.lax.broadcasted_iota(jnp.int32, x.shape, 2)
            x = jnp.where(col < s1, x, 0.0)
        acc_ref[...] += jnp.sum(x, axis=-1)

        @pl.when(k == pl.num_programs(1) - 1)
        def _finalize():
            pooled = acc_ref[...] * inv_s1                       # mean  (bn, Cin)
            gate = jnp.dot(pooled, w_ref[...],
                           preferred_element_type=jnp.float32)   # 1x1 conv
            g_ref[...] = jax.nn.sigmoid(gate).astype(g_ref.dtype)

    return kernel


def _gate_pallas(x1_r, w_r, out_dtype, target, vmem_limit):
    n, cin, s1 = x1_r.shape
    cout = w_r.shape[1]
    bn, s_blk = _pick_gate_blocks(n, cin, s1, x1_r.dtype.itemsize, target)

    return pl.pallas_call(
        _make_gate_kernel(s1, s_blk),
        out_shape=jax.ShapeDtypeStruct((n, cout), out_dtype),
        grid_spec=pltpu.PrefetchScalarGridSpec(
            num_scalar_prefetch=0,
            grid=(pl.cdiv(n, bn), pl.cdiv(s1, s_blk)),
            in_specs=[
                pl.BlockSpec((bn, cin, s_blk), lambda i, k: (i, 0, k)),
                pl.BlockSpec((cin, cout), lambda i, k: (0, 0)),
            ],
            out_specs=pl.BlockSpec((bn, cout), lambda i, k: (i, 0)),
            scratch_shapes=[pltpu.VMEM((bn, cin), jnp.float32)],
        ),
        compiler_params=pltpu.CompilerParams(
            dimension_semantics=("parallel", "arbitrary"),
            vmem_limit_bytes=vmem_limit),
    )(x1_r, w_r)


# ---------------------------------------------------------------------------
# kernel 2: out = gate * x2   (lane-dense HBM streaming pass, 2-D row-packed)
# ---------------------------------------------------------------------------
def _scale_kernel(g_ref, x2_ref, o_ref):
    # g_ref: (r_blk, 1) in x2.dtype -> pure lane-broadcast multiply
    o_ref[...] = x2_ref[...] * g_ref[...]


def _scale_pallas(gate_2d, x2_2d, target, vmem_limit):
    rows, cols = x2_2d.shape
    r_blk, c_blk = _pick_scale_blocks(rows, cols, x2_2d.dtype.itemsize, target)

    return pl.pallas_call(
        _scale_kernel,
        out_shape=jax.ShapeDtypeStruct((rows, cols), x2_2d.dtype),
        grid_spec=pltpu.PrefetchScalarGridSpec(
            num_scalar_prefetch=0,
            grid=(pl.cdiv(rows, r_blk), pl.cdiv(cols, c_blk)),
            in_specs=[
                pl.BlockSpec((r_blk, 1), lambda i, j: (i, 0)),
                pl.BlockSpec((r_blk, c_blk), lambda i, j: (i, j)),
            ],
            out_specs=pl.BlockSpec((r_blk, c_blk), lambda i, j: (i, j)),
        ),
        compiler_params=pltpu.CompilerParams(
            dimension_semantics=("parallel", "parallel"),
            vmem_limit_bytes=vmem_limit),
    )(gate_2d, x2_2d)


# ---------------------------------------------------------------------------
# wrapper
# ---------------------------------------------------------------------------
def _crossfeature_4d(x1, x2, weight, target_block_bytes=None):
    """x1: (N, Cin, H1, W1), x2: (N, Cout, H2, W2), weight: (Cout, Cin)."""
    n, cin, h1, w1 = x1.shape
    n2, cout, h2, w2 = x2.shape
    assert n == n2 and weight.shape == (cout, cin)

    target, vmem_limit = _budget()
    if target_block_bytes is not None:            # test hook for edge paths
        target = int(target_block_bytes)

    # Free reshapes of NCHW: spatial on lanes, no transposes anywhere.
    x1_r = x1.reshape(n, cin, h1 * w1)
    w_r = jnp.transpose(weight, (1, 0)).astype(jnp.float32)      # (Cin, Cout), tiny

    gate = _gate_pallas(x1_r, w_r, x2.dtype, target, vmem_limit)  # (N, Cout)

    # Row-packed 2-D views: channels dense on sublanes, gate layout-matched.
    gate_2d = gate.reshape(n * cout, 1)
    x2_2d = x2.reshape(n * cout, h2 * w2)
    out_2d = _scale_pallas(gate_2d, x2_2d, target, vmem_limit)
    return out_2d.reshape(n, cout, h2, w2)


def crossfeature_forward(x1, x2, weight, target_block_bytes=None):
    """Matches crossfeature.forward: handles 4-D (B,C,H,W) and 5-D (B,T,C,H,W)."""
    if x1.ndim == 5:
        b, t = x1.shape[:2]
        out = _crossfeature_4d(
            x1.reshape((b * t,) + x1.shape[2:]),
            x2.reshape((b * t,) + x2.shape[2:]),
            weight, target_block_bytes)
        return out.reshape((b, t) + out.shape[1:])
    return _crossfeature_4d(x1, x2, weight, target_block_bytes)


# ---------------------------------------------------------------------------
# pure-JAX reference
# ---------------------------------------------------------------------------
def _reference(x1, x2, weight):
    if x1.ndim == 5:
        b, t = x1.shape[:2]
        o = _reference(x1.reshape((b * t,) + x1.shape[2:]),
                       x2.reshape((b * t,) + x2.shape[2:]), weight)
        return o.reshape((b, t) + o.shape[1:])
    pooled = jnp.mean(x1.astype(jnp.float32), axis=(2, 3))        # (N, Cin)
    gate = jax.nn.sigmoid(pooled @ weight.astype(jnp.float32).T)  # (N, Cout)
    return gate.astype(x2.dtype)[:, :, None, None] * x2


if __name__ == "__main__":
    key = jax.random.PRNGKey(0)
    k1, k2, k3, k4, k5, k6, k7 = jax.random.split(key, 7)

    B, T, C_IN, C_OUT, H, W = 2, 3, 4, 8, 16, 16

    # Conv2d(in_channels, out_channels, 1, bias=False) weight: (C_OUT, C_IN)
    weight = jax.random.normal(k1, (C_OUT, C_IN), dtype=jnp.float32) * 0.1

    # 4-D (single-frame) f32
    x1_4d = jax.random.normal(k2, (B, C_IN, H, W), dtype=jnp.float32)
    x2_4d = jax.random.normal(k3, (B, C_OUT, H, W), dtype=jnp.float32)
    out_4d = jax.block_until_ready(crossfeature_forward(x1_4d, x2_4d, weight))
    assert out_4d.shape == (B, C_OUT, H, W)
    assert jnp.allclose(out_4d, _reference(x1_4d, x2_4d, weight), atol=1e-5, rtol=1e-4)

    # 5-D (time-series) f32
    x1_5d = jax.random.normal(k4, (B, T, C_IN, H, W), dtype=jnp.float32)
    x2_5d = jax.random.normal(k5, (B, T, C_OUT, H, W), dtype=jnp.float32)
    out_5d = jax.block_until_ready(crossfeature_forward(x1_5d, x2_5d, weight))
    assert out_5d.shape == (B, T, C_OUT, H, W)
    assert jnp.allclose(out_5d, _reference(x1_5d, x2_5d, weight), atol=1e-5, rtol=1e-4)

    # Ragged-edge paths: odd batch, non-128-multiple spatial sizes, and a tiny
    # block budget to force cdiv edge blocks + the in-kernel spatial mask.
    x1_e = jax.random.normal(k6, (3, C_IN, 20, 13), dtype=jnp.float32)
    x2_e = jax.random.normal(k7, (3, C_OUT, 9, 21), dtype=jnp.float32)
    out_e = jax.block_until_ready(
        crossfeature_forward(x1_e, x2_e, weight, target_block_bytes=4096))
    assert out_e.shape == (3, C_OUT, 9, 21)
    assert jnp.allclose(out_e, _reference(x1_e, x2_e, weight), atol=1e-5, rtol=1e-4)

    # bf16 activations (gate computed in f32, applied in bf16)
    x1_bf, x2_bf = x1_5d.astype(jnp.bfloat16), x2_5d.astype(jnp.bfloat16)
    out_bf = jax.block_until_ready(crossfeature_forward(x1_bf, x2_bf, weight))
    ref_bf = _reference(x1_bf, x2_bf, weight)
    assert jnp.allclose(out_bf.astype(jnp.float32), ref_bf.astype(jnp.float32),
                        atol=3e-2, rtol=3e-2)

    print("KERNEL_OK")
</pallas_src>

<mosaic_0001>
module attributes {stable_mosaic.version = 11 : i64} {
  func.func @kernel(%arg0: i32, %arg1: i32, %arg2: memref<2x4x256xf32, #tpu.memory_space<vmem>>, %arg3: memref<4x8xf32, #tpu.memory_space<vmem>>, %arg4: memref<2x8xf32, #tpu.memory_space<vmem>>, %arg5: memref<2x4xf32, #tpu.memory_space<vmem>>) attributes {dimension_semantics = [#tpu.dimension_semantics<parallel>, #tpu.dimension_semantics<arbitrary>], iteration_bounds = array<i64: 1, 1>, scalar_prefetch = 0 : i64, scratch_operands = 1 : i64, tpu.core_type = #tpu.core_type<tc>, window_params = [{transform_indices = @transform_0, window_bounds = array<i64: 2, 4, 256>}, {pipeline_mode = #tpu.pipeline_mode<synchronous>, transform_indices = @transform_1, window_bounds = array<i64: 4, 8>}, {transform_indices = @transform_2, window_bounds = array<i64: 2, 8>}]} {
    %c0_i32 = arith.constant 0 : i32
    %0 = arith.cmpi eq, %arg1, %c0_i32 : i32
    %1 = arith.extui %0 : i1 to i32
    %c0_i32_0 = arith.constant 0 : i32
    %2 = arith.cmpi ne, %1, %c0_i32_0 : i32
    scf.if %2 {
      %cst_9 = arith.constant 0.000000e+00 : f32
      %11 = vector.broadcast %cst_9 : f32 to vector<2x4xf32>
      %c0_10 = arith.constant 0 : index
      %c0_11 = arith.constant 0 : index
      %12 = vector.load %arg5[%c0_10, %c0_11] : memref<2x4xf32, #tpu.memory_space<vmem>>, vector<2x4xf32>
      tpu.vector_store %arg5[%c0_10, %c0_11], %11 {strides = array<i32>} : memref<2x4xf32, #tpu.memory_space<vmem>>, vector<2x4xf32>,
    } else {
    }
    %c0 = arith.constant 0 : index
    %c0_1 = arith.constant 0 : index
    %c0_2 = arith.constant 0 : index
    %3 = vector.load %arg2[%c0, %c0_1, %c0_2] : memref<2x4x256xf32, #tpu.memory_space<vmem>>, vector<2x4x256xf32>
    %c0_3 = arith.constant 0 : index
    %c0_4 = arith.constant 0 : index
    %4 = vector.load %arg5[%c0_3, %c0_4] : memref<2x4xf32, #tpu.memory_space<vmem>>, vector<2x4xf32>
    %cst = arith.constant dense<0.000000e+00> : vector<2x4xf32>
    %5 = vector.multi_reduction <add>, %3, %cst [2] : vector<2x4x256xf32> to vector<2x4xf32>
    %6 = arith.addf %4, %5 : vector<2x4xf32>
    %c0_5 = arith.constant 0 : index
    %c0_6 = arith.constant 0 : index
    %7 = vector.load %arg5[%c0_5, %c0_6] : memref<2x4xf32, #tpu.memory_space<vmem>>, vector<2x4xf32>
    tpu.vector_store %arg5[%c0_5, %c0_6], %6 {strides = array<i32>} : memref<2x4xf32, #tpu.memory_space<vmem>>, vector<2x4xf32>,
    %c0_i32_7 = arith.constant 0 : i32
    %8 = arith.cmpi eq, %arg1, %c0_i32_7 : i32
    %9 = arith.extui %8 : i1 to i32
    %c0_i32_8 = arith.constant 0 : i32
    %10 = arith.cmpi ne, %9, %c0_i32_8 : i32
    scf.if %10 {
      %c0_9 = arith.constant 0 : index
      %c0_10 = arith.constant 0 : index
      %11 = vector.load %arg5[%c0_9, %c0_10] : memref<2x4xf32, #tpu.memory_space<vmem>>, vector<2x4xf32>
      %cst_11 = arith.constant 3.906250e-03 : f32
      %12 = vector.broadcast %cst_11 : f32 to vector<2x4xf32>
      %13 = arith.mulf %11, %12 : vector<2x4xf32>
      %c0_12 = arith.constant 0 : index
      %c0_13 = arith.constant 0 : index
      %14 = vector.load %arg3[%c0_12, %c0_13] : memref<4x8xf32, #tpu.memory_space<vmem>>, vector<4x8xf32>
      %cst_14 = arith.constant dense<0.000000e+00> : vector<2x8xf32>
      %15 = tpu.matmul %13, %14, %cst_14 {dimension_numbers = #tpu.dot_dimension_numbers<[1], [0], [0], [1], [0, 0, 1, 1], [], []>} : vector<2x4xf32>, vector<4x8xf32>, vector<2x8xf32> -> vector<2x8xf32>
      %16 = arith.negf %15 : vector<2x8xf32>
      %17 = math.exp %16 : vector<2x8xf32>
      %cst_15 = arith.constant 1.000000e+00 : f32
      %18 = vector.broadcast %cst_15 : f32 to vector<2x8xf32>
      %19 = arith.addf %18, %17 : vector<2x8xf32>
      %20 = arith.divf %18, %19 : vector<2x8xf32>
      %c0_16 = arith.constant 0 : index
      %c0_17 = arith.constant 0 : index
      %21 = vector.load %arg4[%c0_16, %c0_17] : memref<2x8xf32, #tpu.memory_space<vmem>>, vector<2x8xf32>
      tpu.vector_store %arg4[%c0_16, %c0_17], %20 {strides = array<i32>} : memref<2x8xf32, #tpu.memory_space<vmem>>, vector<2x8xf32>,
    } else {
    }
    return
  }
  func.func @transform_0(%arg0: i32, %arg1: i32) -> (i32, i32, i32) {
    %c0_i32 = arith.constant 0 : i32
    %c0_i32_0 = arith.constant 0 : i32
    return %arg0, %c0_i32, %arg1 : i32, i32, i32
  }
  func.func @transform_1(%arg0: i32, %arg1: i32) -> (i32, i32) {
    %c0_i32 = arith.constant 0 : i32
    %c0_i32_0 = arith.constant 0 : i32
    %c0_i32_1 = arith.constant 0 : i32
    return %c0_i32, %c0_i32_0 : i32, i32
  }
  func.func @transform_2(%arg0: i32, %arg1: i32) -> (i32, i32) {
    %c0_i32 = arith.constant 0 : i32
    %c0_i32_0 = arith.constant 0 : i32
    return %arg0, %c0_i32 : i32, i32
  }
}

</mosaic_0001>

<bundles_post_ra>
// kernel: tpu_custom_call.1
= control target key start
LH: loop header
LB: loop body
LE: loop exit
PB: predicated region body
PF: predicated region fallthrough
CT: control target
= control target key end

     0   :  { %7 = vsyncpa [#allocation4], 0  ;;  %s349_s0 = inlined_call_operand.hbm [shape: f32[2,4,256], index: 0, kind: input, shape index: {}]   ;;  %s350_s1 = inlined_call_operand.hbm [shape: f32[4,8], index: 1, kind: input, shape index: {}]   ;;  %s351_s2 = inlined_call_operand.hbm [shape: f32[2,8], index: 2, kind: output, shape index: {}]  }
   0x1   :  { %8 = vsyncpa [#allocation7], 0 }
   0x2   :  { %9 = vsyncpa [#allocation5], 0  ;;  %s284_s9 = smov [#allocation3]   ;;  %s212_s13 = scalar_lea.hbm %s349_s0, 256 }
   0x3   :  { %s15_s10 = sshll.u32 %s284_s9, 4  ;;  %p213_p0 = scmp.ne.s32.totalorder %s349_s0, %s212_s13  ;;  %s16_s10 = int_to_ptr.vmem [resolvable:$true] %s15_s10 }
   0x4   :  { %p216_p1 = scmp.lt.u32.totalorder %s212_s13, %s349_s0 }
   0x6   :  { %p218_p2 = pnand %p216_p1, %p213_p0 }
   0x8   :  { %221 = shalt.err (!%p218_p2)
}
   0x9   :  { %s222_s18 = scalar_lea.vmem %s16_s10, 256  ;;  %p227_p4 = scmp.lt.s32.totalorder %s16_s10, %s16_s10 }
   0xa   :  { %p223_p3 = scmp.ne.s32.totalorder %s16_s10, %s222_s18  ;;  %p228_p5 = scmp.lt.s32.totalorder %s222_s18, %s222_s18 }
   0xc   :  { %p229_p6 = por %p228_p5, %p227_p4 }
   0xe   :  { %p230_p7 = pnand %p229_p6, %p223_p3 }
  0x10   :  { %233 = shalt.err (!%p230_p7)
}
  0x11   :  { %s285_s19 = smov 128   ;;  %s286_s20 = smov 8  }
  0x12   :  { %21 = dma.hbm_to_vmem [thread:$0]  %s349_s0, 256, %s16_s10, [#allocation4], %s285_s19, %s285_s19, %s286_s20  }
  0x13   :  { %s287_s23 = smov [#allocation6]   ;;  %s234_s27 = scalar_lea.hbm %s350_s1, 64 }
  0x14   :  { %s28_s24 = sshll.u32 %s287_s23, 4  ;;  %p235_p8 = scmp.ne.s32.totalorder %s350_s1, %s234_s27  ;;  %s29_s24 = int_to_ptr.vmem [resolvable:$true] %s28_s24 }
  0x15   :  { %p238_p9 = scmp.lt.u32.totalorder %s234_s27, %s350_s1 }
  0x17   :  { %p240_p10 = pnand %p238_p9, %p235_p8 }
  0x19   :  { %243 = shalt.err (!%p240_p10)
}
  0x1a   :  { %s244_s4 = scalar_lea.vmem %s29_s24, 64  ;;  %p249_p12 = scmp.lt.s32.totalorder %s29_s24, %s29_s24 }
  0x1b   :  { %p245_p11 = scmp.ne.s32.totalorder %s29_s24, %s244_s4  ;;  %p250_p13 = scmp.lt.s32.totalorder %s244_s4, %s244_s4 }
  0x1d   :  { %p251_p0 = por %p250_p13, %p249_p12 }
  0x1f   :  { %p252_p1 = pnand %p251_p0, %p245_p11 }
  0x21   :  { %255 = shalt.err (!%p252_p1)
}
  0x22   :  { %31 = dma.hbm_to_vmem [thread:$0]  %s350_s1, 64, %s29_s24, [#allocation7]  }
  0x23   :  { %278 = dma.done.wait [#allocation4], 256  }
  0x24   :  { %279 = vsyncadd [#allocation4], 4294967040 }
  0x25   :  { %280 = dma.done.wait [#allocation7], 64  }
  0x26   :  { %281 = vsyncadd [#allocation7], 4294967232  ;;  %vm53_vm0 = vcmask 1043456   ;;  %v44_v0 = vld [vmem:[#allocation3] sm:$0xff]  ;;  %v45_v1 = vld [vmem:[#allocation3 + $0x8] sm:$0xff]  ;;  %vm42_vm1 = vcmask 25600   ;;  %v66_v12 = vlaneseq }
  0x27   :  { %v49_v2 = vcombine.high %v44_v0, %v44_v0  ;;  %v54_v3 = vsel %vm53_vm0, %v44_v0, 0.0  ;;  %v50_v4 = vcombine.high %v45_v1, %v45_v1  ;;  %v59_v6 = vsel %vm53_vm0, %v45_v1, 0.0  ;;  %v87_v11 = vld [vmem:[#allocation6] sm:$0xf]  ;;  %s290_s1 = smov [#allocation8]  }
  0x28   :  { %v288_v10 = vmov 0.0   ;;  %vm289_vm2 = vmmov 0   ;;  %v67_v13 = vand.u32 127, %v66_v12  ;;  %v69_v14 = vshrl.u32 %v66_v12, 7  ;;  %s179_s6 = sshll.u32 %s290_s1, 4  ;;  %s180_s6 = int_to_ptr.vmem [resolvable:$true] %s179_s6 }
  0x29   :  { %v55_v5 = vsel %vm53_vm0, %v49_v2, 0.0  ;;  %v60_v7 = vsel %vm53_vm0, %v50_v4, 0.0  ;;  %43 = vst.msk [vmem:[#allocation2] sm:$0x3] %vm42_vm1, %v288_v10  ;;  %194 = vmatprep.subr.mxu0 %v288_v10  ;;  %196 = vmatprep.mubr.msk.f32.mxu0 %vm289_vm2, %v288_v10  ;;  %vm76_vm3 = vcmask 1041409   ;;  %vm88_vm4 = vcmask 31744   ;;  %p261_p3 = scmp.lt.s32.totalorder %s180_s6, %s180_s6 }
  0x2a   :  { %v56_v8 = vadd.f32 %v55_v5, %v54_v3  ;;  %v61_v9 = vadd.f32 %v60_v7, %v59_v6  ;;  %195 = vmatpush3.msk.msra.mxu0 %vm53_vm0, %v87_v11  ;;  %v70_v16 = vsub.s32 %v67_v13, %v69_v14  ;;  %vm171_vm5 = vcmask 58368   ;;  %s256_s7 = scalar_lea.vmem %s180_s6, 32 }
  0x2b   :  { %p257_p2 = scmp.ne.s32.totalorder %s180_s6, %s256_s7  ;;  %p262_p4 = scmp.lt.s32.totalorder %s256_s7, %s256_s7 }
  0x2c   :  { %57 = vadd.xlane.f32.xlu0 %v56_v8 }
  0x2d   :  { %p263_p5 = por %p262_p4, %p261_p3 }
  0x2f   :  { %p264_p6 = pnand %p263_p5, %p257_p2 }
  0x30   :  { %62 = vadd.xlane.f32.xlu0 %v61_v9  ;;  %v46_v20 = vld [vmem:[#allocation2] sm:$0x3] }
  0xb9   :  { %v58_v15 = vpop.xlane.xlu0 %57 }
  0xba   :  { %v71_v18 = vrot.slane %v58_v15, %v70_v16 }
  0xbd   :  { %v63_v17 = vpop.xlane.xlu0 %62 }
  0xbe   :  { %v75_v19 = vrot.slane %v63_v17, %v70_v16 }
  0xc0   :  { %v77_v21 = vsel %vm76_vm3, %v75_v19, %v71_v18 }
  0xc1   :  { %v79_v22 = vadd.f32 %v77_v21, %v46_v20 }
  0xc3   :  { %81 = vst.msk [vmem:[#allocation2] sm:$0x3] %vm42_vm1, %v79_v22 }
  0xca   :  { %v85_v23 = vld [vmem:[#allocation2] sm:$0x3] }
  0xcb   :  { %v86_v24 = vmul.f32 0.00390625, %v85_v23 }
  0xcd   :  { %197 = vmatmul.mubr.msk.f32.vlgmr.msra.gmra.mrb[0].mxu0 %vm88_vm4, %v86_v24 }
 0x1a0   :  { %v161_v25 = vpop.f32.mrb[0].mxu0 }
 0x1a1   :  { %v191_v26 = vmul.f32 -1.442695, %v161_v25  ;;  %v198_v27 = vpop.f32.mrb[1].mxu0 }
 0x1a3   :  { %208 = vpow2.f32 %v191_v26 }
 0x1ad   :  { %v209_v28 = vpop.eup %208 }
 0x1ae   :  { %v168_v29 = vadd.f32 1.0, %v209_v28 }
 0x1b0   :  { %210 = vrcp.f32 %v168_v29 }
 0x1ba   :  { %v211_v30 = vpop.eup %210 }
 0x1bb   :  { %172 = vst.msk [vmem:[#allocation8] sm:$0x3] %vm171_vm5, %v211_v30 }
 0x1bc   :  { %267 = shalt.err (!%p264_p6)
}
 0x1bd   :  { %s268_s10 = scalar_lea.hbm %s351_s2, 32 }
 0x1be   :  { %p269_p7 = scmp.ne.s32.totalorder %s351_s2, %s268_s10  ;;  %p272_p8 = scmp.lt.u32.totalorder %s268_s10, %s351_s2 }
 0x1c0   :  { %p274_p9 = pnand %p272_p8, %p269_p7 }
 0x1c2   :  { %277 = shalt.err (!%p274_p9)
}
 0x1c3   :  { %182 = dma.vmem_to_hbm [thread:$0]  %s180_s6, 32, %s351_s2, [#allocation5]  }
 0x1c4   :  { %282 = dma.done.wait [#allocation5], 32  }
 0x1c5   :  { %283 = vsyncadd [#allocation5], 4294967264 }
 0x1c6   :  { %186 = vsyncpa [#allocation4], 1 }
 0x1c7   :  { %187 = vsyncpa [#allocation7], 1 }
 0x1c8   :  { %188 = vsyncpa [#allocation5], 1 }

</bundles_post_ra>
